<compile_context>
chip_gen: v7x
topology: tpu7x:2x2x1
jax: 0.10.0
libtpu: 0.0.40
codegen_flags: <defaults>
</compile_context>

<pallas_src>
import functools
import numpy as np
import jax
import jax.numpy as jnp
from jax import lax
from jax.experimental import pallas as pl
from jax.experimental.pallas import tpu as pltpu


def _cdiv(a, b):
    return (a + b - 1) // b


def _round_up(a, m):
    return _cdiv(a, m) * m


def _energy_kernel(x_ref, bias_ref, o_ref, acc_ref, *, tb, td, rem, single_step):
    # x_ref:    (TB, TD) VMEM tile of the flattened input (native dtype)
    # bias_ref: (1,)     SMEM scalar (explicit_bias)
    # o_ref:    (TB, 1)  VMEM output block (resident across the reduction axis)
    # acc_ref:  (TB,128) f32 lane-dense VMEM scratch accumulator (unused if single_step)
    if single_step:
        # Exactly one D tile per batch block (td == D, full-dim block): no
        # cross-step accumulation, write the output directly.
        xf = x_ref[...].astype(jnp.float32)
        o_ref[...] = 0.5 * jnp.sum(xf * xf, axis=-1, keepdims=True) + bias_ref[0]
        return

    k = pl.program_id(1)
    nk = pl.num_programs(1)

    @pl.when(k == 0)
    def _init():
        acc_ref[...] = jnp.zeros_like(acc_ref)

    def _accumulate(x_f32):
        # td is a multiple of 128 on this path: fold lanes with pure VALU vreg adds
        # (no per-step cross-lane reduce, lane-dense accumulator store).
        sq = x_f32 * x_f32
        partial = sq[:, 0:128]
        for c in range(1, td // 128):
            partial = partial + sq[:, c * 128:(c + 1) * 128]
        acc_ref[...] += partial

    if rem == td:
        # D divides evenly into td-wide tiles: no masking needed anywhere.
        _accumulate(x_ref[...].astype(jnp.float32))
    else:
        @pl.when(k < nk - 1)
        def _full_tile():
            _accumulate(x_ref[...].astype(jnp.float32))

        @pl.when(k == nk - 1)
        def _ragged_tile():
            # Last D tile is ragged: out-of-bounds block columns hold undefined
            # data, so zero them (before squaring) with a column-index mask.
            col = lax.broadcasted_iota(jnp.int32, (tb, td), 1)
            xf = jnp.where(col < rem, x_ref[...].astype(jnp.float32), 0.0)
            _accumulate(xf)

    @pl.when(k == nk - 1)
    def _finalize():
        # Single cross-lane reduce per batch block; 0.5 and bias applied only here.
        row_sum = jnp.sum(acc_ref[...], axis=-1, keepdims=True)
        o_ref[...] = 0.5 * row_sum + bias_ref[0]


def energy_forward(x, explicit_bias, *, tile_bytes=8 * 1024 * 1024,
                   tb_max=512, td_max=16384):
    """Pallas equivalent of Energy.forward (censoring=None, truncator=None)."""
    B = int(x.shape[0])
    D = int(np.prod(x.shape[1:])) if x.ndim > 1 else 1
    x2d = x.reshape(B, D)  # metadata-only reshape; kernel streams native dtype

    itemsize = jnp.dtype(x2d.dtype).itemsize
    sublane = {4: 8, 2: 16, 1: 32}.get(itemsize, 8)

    # ---- batch (parallel) axis: balanced split, no padding ----
    # Force >= 2 blocks when feasible so v7x's two TensorCores both stream.
    nb_min = 2 if B >= 2 * sublane else 1
    nb = max(_cdiv(B, tb_max), nb_min)
    if nb == 1:
        tb = B                                   # full-dim block (any B allowed)
    else:
        tb = _round_up(_cdiv(B, nb), sublane)    # sublane-aligned, <= B
        nb = _cdiv(B, tb)

    # ---- reduction (D) axis: byte-budgeted balanced split, no padding ----
    td_cap = (tile_bytes // max(1, tb * itemsize)) // 128 * 128
    td_cap = max(128, min(td_cap, td_max))
    nd = _cdiv(D, td_cap)
    if nd == 1:
        td = D                                   # full-dim block; handled in one step
        rem = D
    else:
        td = _round_up(_cdiv(D, nd), 128)        # lane-aligned, strictly < D
        nd = _cdiv(D, td)
        rem = D - (nd - 1) * td                  # valid columns of the last tile

    kernel = functools.partial(_energy_kernel, tb=tb, td=td, rem=rem,
                               single_step=(nd == 1))
    bias = jnp.asarray(explicit_bias, dtype=jnp.float32).reshape((1,))

    out = pl.pallas_call(
        kernel,
        out_shape=jax.ShapeDtypeStruct((B, 1), jnp.float32),
        grid=(nb, nd),
        in_specs=[
            pl.BlockSpec((tb, td), lambda i, k: (i, k)),
            # explicit_bias lives in SMEM as a scalar, untiled.
            pl.BlockSpec(memory_space=pltpu.MemorySpace.SMEM),
        ],
        # Same output block for every k -> resident in VMEM across the reduction
        # axis, written back once per batch block.
        out_specs=pl.BlockSpec((tb, 1), lambda i, k: (i, 0)),
        scratch_shapes=[pltpu.VMEM((tb, 128), jnp.float32)],
        compiler_params=pltpu.CompilerParams(
            dimension_semantics=("parallel", "arbitrary"),
            vmem_limit_bytes=48 * 1024 * 1024,
        ),
    )(x2d, bias)
    return out


class EnergyPallas:
    """Mirror of the PyTorch Energy module (forward path only)."""

    def __init__(self):
        # nn.Parameter(torch.ones(1) * 10) — deterministic init.
        self.explicit_bias = jnp.ones((1,), dtype=jnp.float32) * 10.0
        self.truncator = None
        self.censoring = None

    def set_truncator(self, truncation):
        self.truncator = truncation  # TODO(synk): truncator path not translated

    def set_censoring(self, censoring):
        self.censoring = censoring   # TODO(synk): censoring path not translated

    def __call__(self, x):
        # censoring is None -> identity; truncator is None -> return energy(x)
        return energy_forward(x, self.explicit_bias)

    def get_parameters(self):
        return {"explicit_bias": float(self.explicit_bias[0])}


if __name__ == "__main__":
    key = jax.random.PRNGKey(0)
    x = jax.random.normal(key, (2, 4, 16, 16), dtype=jnp.float32)  # NCHW

    model = EnergyPallas()
    out = model(x)
    out = jax.block_until_ready(out)

    # reference check in plain JAX
    ref = 0.5 * jnp.sum(x.reshape(2, -1) ** 2, axis=-1, keepdims=True) + 10.0
    np.testing.assert_allclose(np.asarray(out), np.asarray(ref), rtol=1e-5, atol=1e-5)

    assert out.shape == (2, 1) and out.dtype == jnp.float32
    print("KERNEL_OK")
</pallas_src>

<mosaic_0001>
module attributes {stable_mosaic.version = 11 : i64} {
  func.func @_energy_kernel(%arg0: i32, %arg1: i32, %arg2: memref<2x1024xf32, #tpu.memory_space<vmem>>, %arg3: memref<1xf32, #tpu.memory_space<smem>>, %arg4: memref<2x1xf32, #tpu.memory_space<vmem>>, %arg5: memref<2x128xf32, #tpu.memory_space<vmem>>) attributes {dimension_semantics = [#tpu.dimension_semantics<parallel>, #tpu.dimension_semantics<arbitrary>], iteration_bounds = array<i64: 1, 1>, scalar_prefetch = 0 : i64, scratch_operands = 1 : i64, tpu.core_type = #tpu.core_type<tc>, window_params = [{transform_indices = @transform_0, window_bounds = array<i64: 2, 1024>}, {transform_indices = @transform_1, window_bounds = array<i64: 1>}, {transform_indices = @transform_2, window_bounds = array<i64: 2, 1>}]} {
    %c0 = arith.constant 0 : index
    %c0_0 = arith.constant 0 : index
    %0 = vector.load %arg2[%c0, %c0_0] : memref<2x1024xf32, #tpu.memory_space<vmem>>, vector<2x1024xf32>
    %1 = arith.mulf %0, %0 : vector<2x1024xf32>
    %cst = arith.constant dense<0.000000e+00> : vector<2xf32>
    %2 = vector.multi_reduction <add>, %1, %cst [1] : vector<2x1024xf32> to vector<2xf32>
    %3 = vector.shape_cast %2 : vector<2xf32> to vector<2x1xf32>
    %cst_1 = arith.constant 5.000000e-01 : f32
    %4 = vector.broadcast %cst_1 : f32 to vector<2x1xf32>
    %5 = arith.mulf %4, %3 : vector<2x1xf32>
    %c0_2 = arith.constant 0 : index
    %6 = memref.load %arg3[%c0_2] : memref<1xf32, #tpu.memory_space<smem>>
    %7 = vector.broadcast %6 : f32 to vector<2x1xf32>
    %8 = arith.addf %5, %7 : vector<2x1xf32>
    %c0_3 = arith.constant 0 : index
    %c0_4 = arith.constant 0 : index
    %9 = vector.load %arg4[%c0_3, %c0_4] : memref<2x1xf32, #tpu.memory_space<vmem>>, vector<2x1xf32>
    tpu.vector_store %arg4[%c0_3, %c0_4], %8 {strides = array<i32>} : memref<2x1xf32, #tpu.memory_space<vmem>>, vector<2x1xf32>,
    return
  }
  func.func @transform_0(%arg0: i32, %arg1: i32) -> (i32, i32) {
    %c0_i32 = arith.constant 0 : i32
    return %arg0, %arg1 : i32, i32
  }
  func.func @transform_1(%arg0: i32, %arg1: i32) -> i32 {
    %c0_i32 = arith.constant 0 : i32
    %c0_i32_0 = arith.constant 0 : i32
    return %c0_i32 : i32
  }
  func.func @transform_2(%arg0: i32, %arg1: i32) -> (i32, i32) {
    %c0_i32 = arith.constant 0 : i32
    %c0_i32_0 = arith.constant 0 : i32
    return %arg0, %c0_i32 : i32, i32
  }
}

</mosaic_0001>

<bundles_post_ra>
// kernel: tpu_custom_call.1
= control target key start
LH: loop header
LB: loop body
LE: loop exit
PB: predicated region body
PF: predicated region fallthrough
CT: control target
= control target key end

     0   :  { %8 = vsyncpa [#allocation5], 0  ;;  %s127_s9 = smov [#allocation4]   ;;  %s170_s0 = inlined_call_operand.hbm [shape: f32[2,1024], index: 0, kind: input, shape index: {}]   ;;  %s171_s1 = inlined_call_operand.<no memory space> [shape: f32[1], index: 1, kind: input, shape index: {}]   ;;  %s172_s2 = inlined_call_operand.vmem [shape: f32[2,1], index: 2, kind: output, shape index: {}]  }
   0x1   :  { %s15_s10 = sshll.u32 %s127_s9, 4  ;;  %s103_s13 = scalar_lea.hbm %s170_s0, 256  ;;  %s16_s10 = int_to_ptr.vmem [resolvable:$true] %s15_s10 }
   0x2   :  { %p104_p0 = scmp.ne.s32.totalorder %s170_s0, %s103_s13  ;;  %p107_p1 = scmp.lt.u32.totalorder %s103_s13, %s170_s0 }
   0x4   :  { %p109_p2 = pnand %p107_p1, %p104_p0 }
   0x6   :  { %112 = shalt.err (!%p109_p2)
}
   0x7   :  { %s113_s18 = scalar_lea.vmem %s16_s10, 256  ;;  %p118_p4 = scmp.lt.s32.totalorder %s16_s10, %s16_s10 }
   0x8   :  { %p114_p3 = scmp.ne.s32.totalorder %s16_s10, %s113_s18  ;;  %p119_p5 = scmp.lt.s32.totalorder %s113_s18, %s113_s18 }
   0xa   :  { %p120_p6 = por %p119_p5, %p118_p4 }
   0xc   :  { %p121_p7 = pnand %p120_p6, %p114_p3 }
   0xe   :  { %124 = shalt.err (!%p121_p7)
}
   0xf   :  { %18 = dma.hbm_to_vmem [thread:$0]  %s170_s0, 256, %s16_s10, [#allocation5]  }
  0x10   :  { %125 = dma.done.wait [#allocation5], 256  }
  0x11   :  { %126 = vsyncadd [#allocation5], 4294967040  ;;  %v34_v0 = vlaneseq  ;;  %v128_v1 = vmov 1983009808   ;;  %v24_v6 = vld [vmem:[#allocation4] sm:$0xff]  ;;  %v25_v7 = vld [vmem:[#allocation4 + $0x8] sm:$0xff]  ;;  %v92_v36 = vstv %s171_s1 }
  0x12   :  { %v32_v2 = vunpack.c.l.s4 %v128_v1  ;;  %v26_v8 = vmul.f32 %v24_v6, %v24_v6  ;;  %v27_v9 = vmul.f32 %v25_v7, %v25_v7  ;;  %vm72_vm0 = vcmask 1041408  }
  0x13   :  { %v35_v3 = vshrl.u32 %v34_v0, 7  ;;  %vm94_vm1 = vcmask 1024  }
  0x14   :  { %v33_v4 = vunpack.c.0.s8 %v32_v2  ;;  %v30_v10 = vcombine.high %v26_v8, %v26_v8  ;;  %v47_v14 = vcombine.high %v27_v9, %v27_v9 }
  0x16   :  { %v36_v5 = vsub.s32 %v33_v4, %v35_v3 }
  0x18   :  { %v37_v11 = vrot.slane %v26_v8, %v36_v5  ;;  %v44_v12 = vrot.slane %v30_v10, %v36_v5  ;;  %v54_v15 = vrot.slane %v27_v9, %v36_v5  ;;  %v61_v21 = vrot.slane %v47_v14, %v36_v5 }
  0x1a   :  { %v45_v13 = vcombine.high %v37_v11, %v37_v11  ;;  %v73_v16 = vsel %vm72_vm0, %v37_v11, 0.0  ;;  %v46_v17 = vcombine.high %v44_v12, %v44_v12  ;;  %v76_v19 = vsel %vm72_vm0, %v44_v12, 0.0 }
  0x1b   :  { %v62_v22 = vcombine.high %v54_v15, %v54_v15  ;;  %v80_v25 = vsel %vm72_vm0, %v54_v15, 0.0  ;;  %v63_v27 = vcombine.high %v61_v21, %v61_v21  ;;  %v84_v30 = vsel %vm72_vm0, %v61_v21, 0.0 }
  0x1c   :  { %v74_v18 = vsel %vm72_vm0, %v45_v13, 0.0  ;;  %v78_v23 = vsel %vm72_vm0, %v46_v17, 0.0 }
  0x1d   :  { %v75_v20 = vadd.f32 %v74_v18, %v73_v16  ;;  %v82_v28 = vsel %vm72_vm0, %v62_v22, 0.0  ;;  %v86_v32 = vsel %vm72_vm0, %v63_v27, 0.0 }
  0x1f   :  { %v77_v24 = vadd.f32 %v76_v19, %v75_v20 }
  0x21   :  { %v79_v26 = vadd.f32 %v78_v23, %v77_v24 }
  0x23   :  { %v81_v29 = vadd.f32 %v80_v25, %v79_v26 }
  0x25   :  { %v83_v31 = vadd.f32 %v82_v28, %v81_v29 }
  0x27   :  { %v85_v33 = vadd.f32 %v84_v30, %v83_v31 }
  0x29   :  { %v87_v34 = vadd.f32 %v86_v32, %v85_v33 }
  0x2b   :  { %88 = vadd.xlane.f32.xlu0 %v87_v34 }
  0xb8   :  { %v89_v35 = vpop.xlane.xlu0 %88 }
  0xb9   :  { %v90_v37 = vmul.f32 0.5, %v89_v35 }
  0xbb   :  { %v93_v38 = vadd.f32 %v92_v36, %v90_v37 }
  0xbd   :  { %95 = vst.msk [vmem:[%s172_s2] sm:$0x3] %vm94_vm1, %v93_v38 }
  0xbe   :  { %100 = vsyncpa [#allocation5], 1 }

</bundles_post_ra>
